<compile_context>
chip_gen: v6e
topology: v6e:2x2x1
jax: 0.10.0
libtpu: 0.0.40
codegen_flags: <defaults>
</compile_context>

<pallas_src>
import jax
import jax.numpy as jnp
from jax.experimental import pallas as pl
from jax.experimental.pallas import tpu as pltpu


_LANE = 128                        # TPU lane width
_MAX_LANE_WIDTH = 4096             # cap on the lane-dense last dim
_TARGET_BLOCK_ROWS = 512           # aim for >= 512-row blocks when possible
_MAX_TILE_BYTES = 4 * 1024 * 1024  # 4 x tile (in+out double buffers) << 32 MiB
                                   # scoped VMEM -> v7x-safe without raising limits


def identity_forward(*xs):
    """Exact equivalent of Identity.forward(*x): zero data movement, no kernel."""
    return xs


def _identity_copy_kernel(x_ref, o_ref):
    # Bare pass-through: keep the body a single assignment so Mosaic lowers it
    # to straight vld/vst (v5e has only one vector-store slot per bundle).
    o_ref[...] = x_ref[...]


def _lane_dense_width(n: int) -> int:
    """Largest multiple of 128 (<= cap) that divides n, or 0 if none."""
    if n % _LANE != 0:
        return 0
    c = _LANE
    while c * 2 <= _MAX_LANE_WIDTH and n % (c * 2) == 0:
        c *= 2
    return c


def _identity_one_pallas(x: jax.Array) -> jax.Array:
    if x.size == 0:
        return x
    n = x.size
    c = _lane_dense_width(n)

    if c == 0:
        # Not lane-alignable (tiny / odd-sized tensor): single full-block copy.
        flat = x.reshape(1, n)
        out = pl.pallas_call(
            _identity_copy_kernel,
            out_shape=jax.ShapeDtypeStruct(flat.shape, flat.dtype),
            in_specs=[pl.BlockSpec(flat.shape, lambda: (0, 0))],
            out_specs=pl.BlockSpec(flat.shape, lambda: (0, 0)),
            grid=(),
            input_output_aliases={0: 0},
        )(flat)
        return out.reshape(x.shape)

    rows = n // c
    flat = x.reshape(rows, c)

    # Block rows: target >= 512, but stay within the per-tile VMEM budget and
    # respect the (8, 128) tiling rule (multiple of 8, or the full extent).
    bytes_per_row = c * flat.dtype.itemsize
    max_rows_by_vmem = max(8, (_MAX_TILE_BYTES // bytes_per_row) // 8 * 8)
    block_rows = min(rows, _TARGET_BLOCK_ROWS, max_rows_by_vmem)
    if block_rows != rows:
        block_rows = max(8, (block_rows // 8) * 8)

    out = pl.pallas_call(
        _identity_copy_kernel,
        out_shape=jax.ShapeDtypeStruct(flat.shape, flat.dtype),
        grid=(pl.cdiv(rows, block_rows),),
        in_specs=[pl.BlockSpec((block_rows, c), lambda i: (i, 0))],
        out_specs=pl.BlockSpec((block_rows, c), lambda i: (i, 0)),
        input_output_aliases={0: 0},
        compiler_params=pltpu.CompilerParams(
            dimension_semantics=("parallel",)),
    )(flat)
    return out.reshape(x.shape)


def identity_forward_pallas(*xs):
    """Identity via Pallas copy kernels (for when a kernel must be on the trace)."""
    # TODO(synk): arrays of different shapes use separate pallas_calls; wrap the
    # whole function in jax.jit (as in __main__) to amortize dispatch overhead.
    return tuple(_identity_one_pallas(x) for x in xs)


if __name__ == "__main__":
    key = jax.random.PRNGKey(0)
    k1, k2 = jax.random.split(key)

    x_img = jax.random.normal(k1, (2, 4, 16, 16), dtype=jnp.float32)  # NCHW-ish
    x_seq = jax.random.normal(k2, (2, 8, 32), dtype=jnp.float32)      # (B, S, D)

    # Primary (fastest) path: pure pass-through, zero data movement.
    outs_fast = identity_forward(x_img, x_seq)
    assert outs_fast[0] is x_img and outs_fast[1] is x_seq

    # Pallas path: fused under one jit so dispatch overhead is amortized.
    outs = jax.jit(identity_forward_pallas)(x_img, x_seq)
    outs = jax.block_until_ready(outs)

    assert isinstance(outs, tuple) and len(outs) == 2
    assert outs[0].shape == x_img.shape and outs[0].dtype == x_img.dtype
    assert outs[1].shape == x_seq.shape and outs[1].dtype == x_seq.dtype
    assert jnp.array_equal(outs[0], x_img)
    assert jnp.array_equal(outs[1], x_seq)

    print("KERNEL_OK")
</pallas_src>

<mosaic_0001>
module attributes {stable_mosaic.version = 11 : i64} {
  func.func @_identity_copy_kernel(%arg0: i32, %arg1: memref<1x512xf32, #tpu.memory_space<vmem>>, %arg2: memref<1x512xf32, #tpu.memory_space<vmem>>) attributes {dimension_semantics = [#tpu.dimension_semantics<parallel>], iteration_bounds = array<i64: 1>, scalar_prefetch = 0 : i64, scratch_operands = 0 : i64, tpu.core_type = #tpu.core_type<tc>, window_params = [{transform_indices = @transform_0, window_bounds = array<i64: 1, 512>}, {transform_indices = @transform_1, window_bounds = array<i64: 1, 512>}]} {
    %c0 = arith.constant 0 : index
    %c0_0 = arith.constant 0 : index
    %0 = vector.load %arg1[%c0, %c0_0] : memref<1x512xf32, #tpu.memory_space<vmem>>, vector<1x512xf32>
    %c0_1 = arith.constant 0 : index
    %c0_2 = arith.constant 0 : index
    %1 = vector.load %arg2[%c0_1, %c0_2] : memref<1x512xf32, #tpu.memory_space<vmem>>, vector<1x512xf32>
    tpu.vector_store %arg2[%c0_1, %c0_2], %0 {strides = array<i32>} : memref<1x512xf32, #tpu.memory_space<vmem>>, vector<1x512xf32>,
    return
  }
  func.func @transform_0(%arg0: i32) -> (i32, i32) {
    %c0_i32 = arith.constant 0 : i32
    %c0_i32_0 = arith.constant 0 : i32
    return %arg0, %c0_i32 : i32, i32
  }
  func.func @transform_1(%arg0: i32) -> (i32, i32) {
    %c0_i32 = arith.constant 0 : i32
    %c0_i32_0 = arith.constant 0 : i32
    return %arg0, %c0_i32 : i32, i32
  }
}

module attributes {stable_mosaic.version = 11 : i64} {
  func.func @_identity_copy_kernel(%arg0: i32, %arg1: memref<1x2048xf32, #tpu.memory_space<vmem>>, %arg2: memref<1x2048xf32, #tpu.memory_space<vmem>>) attributes {dimension_semantics = [#tpu.dimension_semantics<parallel>], iteration_bounds = array<i64: 1>, scalar_prefetch = 0 : i64, scratch_operands = 0 : i64, tpu.core_type = #tpu.core_type<tc>, window_params = [{transform_indices = @transform_0, window_bounds = array<i64: 1, 2048>}, {transform_indices = @transform_1, window_bounds = array<i64: 1, 2048>}]} {
    %c0 = arith.constant 0 : index
    %c0_0 = arith.constant 0 : index
    %0 = vector.load %arg1[%c0, %c0_0] : memref<1x2048xf32, #tpu.memory_space<vmem>>, vector<1x2048xf32>
    %c0_1 = arith.constant 0 : index
    %c0_2 = arith.constant 0 : index
    %1 = vector.load %arg2[%c0_1, %c0_2] : memref<1x2048xf32, #tpu.memory_space<vmem>>, vector<1x2048xf32>
    tpu.vector_store %arg2[%c0_1, %c0_2], %0 {strides = array<i32>} : memref<1x2048xf32, #tpu.memory_space<vmem>>, vector<1x2048xf32>,
    return
  }
  func.func @transform_0(%arg0: i32) -> (i32, i32) {
    %c0_i32 = arith.constant 0 : i32
    %c0_i32_0 = arith.constant 0 : i32
    return %arg0, %c0_i32 : i32, i32
  }
  func.func @transform_1(%arg0: i32) -> (i32, i32) {
    %c0_i32 = arith.constant 0 : i32
    %c0_i32_0 = arith.constant 0 : i32
    return %arg0, %c0_i32 : i32, i32
  }
}

</mosaic_0001>

<bundles_post_ra>
// kernel: identity_forward_pallas.2
= control target key start
LH: loop header
LB: loop body
LE: loop exit
PB: predicated region body
PF: predicated region fallthrough
CT: control target
= control target key end

     0   :  { %s38_s0 = inlined_call_operand.vmem [shape: f32[1,2048], index: 0, kind: input, shape index: {}, may-alias: {0,1}]   ;;  %s39_s1 = inlined_call_operand.vmem [shape: f32[1,2048], index: 1, kind: output, shape index: {}, may-alias: {0,1}]  }
   0x1   :  { %v8_v0 = vld [vmem:[%s38_s0] sm:$0xff]  ;;  %v9_v1 = vld [vmem:[%s38_s0 + $0x8] sm:$0xff] }
   0x2   :  { %10 = vst [vmem:[%s39_s1] sm:$0xff] %v8_v0  ;;  %11 = vst [vmem:[%s39_s1 + $0x8] sm:$0xff] %v9_v1 }

// kernel: identity_forward_pallas.3
= control target key start
LH: loop header
LB: loop body
LE: loop exit
PB: predicated region body
PF: predicated region fallthrough
CT: control target
= control target key end

     0   :  { %v9_v0 = vlaneseq  ;;  %s34_s0 = inlined_call_operand.vmem [shape: f32[1,512], index: 0, kind: input, shape index: {}, may-alias: {0,1}]   ;;  %s35_s1 = inlined_call_operand.vmem [shape: f32[1,512], index: 1, kind: output, shape index: {}, may-alias: {0,1}]  }
   0x1   :  { %v8_v1 = vld [vmem:[%s34_s0] sm:$0xf] }
   0x2   :  { %vm11_vm0 = vcmp.lt.s32.totalorder %v9_v0, 512 }
   0x3   :  { %13 = vst.msk [vmem:[%s35_s1] sm:$0xf] %vm11_vm0, %v8_v1 }

</bundles_post_ra>
